<compile_context>
chip_gen: v6e
topology: v6e:2x2x1
jax: 0.10.0
libtpu: 0.0.40
codegen_flags: <defaults>
</compile_context>

<pallas_src>
import functools

import jax
import jax.numpy as jnp
from jax.experimental import pallas as pl
from jax.experimental.pallas import tpu as pltpu


def _round_up(n: int, m: int) -> int:
    return ((n + m - 1) // m) * m


# ----------------------------------------------------------------------------
# Kernels
# ----------------------------------------------------------------------------
def _logreg_fwd_kernel(x_ref, w_ref, b_ref, o_ref, *, num_classes):
    # In-kernel f32 -> bf16 cast (VPU slot, hidden under the x DMA / MXU).
    x = x_ref[...].astype(w_ref.dtype)
    acc = jnp.dot(x, w_ref[...], preferred_element_type=jnp.float32)
    acc = acc + b_ref[...]                                  # [1, Cp] broadcast
    # Value-slice to the real classes BEFORE sigmoid + store: EUP work and the
    # output HBM traffic cover C lanes, not the 128-padded Cp.
    o_ref[...] = jax.nn.sigmoid(acc[:, :num_classes]).astype(o_ref.dtype)


def _logreg_argmax_kernel(x_ref, w_ref, b_ref, o_ref, *, num_classes):
    # Fused predict(): argmax over raw logits (sigmoid is monotonic -> skip it).
    x = x_ref[...].astype(w_ref.dtype)
    logits = jnp.dot(x, w_ref[...], preferred_element_type=jnp.float32)
    logits = logits + b_ref[...]
    col = jax.lax.broadcasted_iota(jnp.int32, logits.shape, 1)
    # Mask the padded weight/bias lanes so they can never win the argmax.
    logits = jnp.where(col < num_classes, logits, -jnp.inf)
    # First-match argmax via max + min-index (XLU cross-lane reduces).
    m = jnp.max(logits, axis=-1, keepdims=True)
    idx = jnp.where(logits == m, col, logits.shape[-1])
    o_ref[...] = jnp.min(idx, axis=-1, keepdims=True).astype(jnp.int32)


# ----------------------------------------------------------------------------
# Parameter prep (run once, reuse across inferences)
# ----------------------------------------------------------------------------
def prepare_params(weight, bias, *, compute_dtype=jnp.bfloat16):
    """Transpose, pad classes to a lane-dense 128 multiple (MXU operand only),
    cast weights to the MXU compute dtype. Hoisted out of the per-call path."""
    C, D = weight.shape
    Cp = _round_up(C, 128)
    w_t = jnp.zeros((D, Cp), compute_dtype).at[:, :C].set(
        weight.T.astype(compute_dtype))
    b2 = jnp.zeros((1, Cp), jnp.float32).at[:, :C].set(bias.astype(jnp.float32))
    return w_t, b2, C


# ----------------------------------------------------------------------------
# Tiling / VMEM planning
# ----------------------------------------------------------------------------
def _tile_plan(B, D, Cp, out_bytes_per_row, tb):
    row_align = 8                       # x stays f32 in HBM
    TB = min(tb, _round_up(B, row_align))
    # v7x megacore: a single grid step leaves one TensorCore (and half the
    # per-chip HBM BW) idle — split when the batch is big enough to matter.
    if pl.cdiv(B, TB) < 2 and B >= 256:
        TB = _round_up(pl.cdiv(B, 2), row_align)
    # Conservative VMEM estimate (everything double-buffered) so large D /
    # large TB don't overshoot the scoped limit (16 MiB v5e default, 32 MiB
    # v6e/v7x default, 64 MiB physical on v7x).
    budget = 40 << 20

    def est(t):
        return (2 * t * D * 4          # f32 x tiles
                + 2 * D * Cp * 2       # bf16 W^T (budget 2 even if resident)
                + 2 * Cp * 4           # bias
                + 2 * t * out_bytes_per_row)

    while TB > row_align and est(TB) > budget:
        TB = max(row_align, _round_up(TB // 2, row_align))
    vmem_limit = min(64 << 20, max(est(TB) + (4 << 20), 16 << 20))
    return TB, vmem_limit


# ----------------------------------------------------------------------------
# pallas_call wrappers
# ----------------------------------------------------------------------------
@functools.partial(jax.jit, static_argnames=("num_classes", "tb"))
def _logreg_pallas(x, w_t, b2, *, num_classes: int, tb: int = 1024):
    """x: [B, D] f32; w_t: [D, Cp] bf16; b2: [1, Cp] f32 -> probs [B, C] f32."""
    B, D = x.shape
    Cp = w_t.shape[1]
    C = num_classes
    TB, vmem_limit = _tile_plan(B, D, Cp, C * 4, tb)

    return pl.pallas_call(
        functools.partial(_logreg_fwd_kernel, num_classes=C),
        out_shape=jax.ShapeDtypeStruct((B, C), jnp.float32),
        grid=(pl.cdiv(B, TB),),
        in_specs=[
            pl.BlockSpec((TB, D), lambda i: (i, 0)),    # streamed x tiles (f32)
            pl.BlockSpec((D, Cp), lambda i: (0, 0)),    # resident W^T
            pl.BlockSpec((1, Cp), lambda i: (0, 0)),    # resident bias
        ],
        out_specs=pl.BlockSpec((TB, C), lambda i: (i, 0)),   # real-width output
        compiler_params=pltpu.CompilerParams(
            dimension_semantics=("parallel",),          # 2-TC split on v7x
            vmem_limit_bytes=vmem_limit,
        ),
        cost_estimate=pl.CostEstimate(
            flops=2 * B * D * Cp,
            transcendentals=B * C,
            bytes_accessed=B * D * 4 + D * Cp * 2 + Cp * 4 + B * C * 4,
        ),
    )(x, w_t, b2)


@functools.partial(jax.jit, static_argnames=("num_classes", "tb"))
def _predict_pallas(x, w_t, b2, *, num_classes: int, tb: int = 1024):
    """Fused predict: argmax over classes, int32 [B]."""
    B, D = x.shape
    Cp = w_t.shape[1]
    C = num_classes
    TB, vmem_limit = _tile_plan(B, D, Cp, 4, tb)

    out = pl.pallas_call(
        functools.partial(_logreg_argmax_kernel, num_classes=C),
        out_shape=jax.ShapeDtypeStruct((B, 1), jnp.int32),
        grid=(pl.cdiv(B, TB),),
        in_specs=[
            pl.BlockSpec((TB, D), lambda i: (i, 0)),
            pl.BlockSpec((D, Cp), lambda i: (0, 0)),
            pl.BlockSpec((1, Cp), lambda i: (0, 0)),
        ],
        out_specs=pl.BlockSpec((TB, 1), lambda i: (i, 0)),
        compiler_params=pltpu.CompilerParams(
            dimension_semantics=("parallel",),
            vmem_limit_bytes=vmem_limit,
        ),
        cost_estimate=pl.CostEstimate(
            flops=2 * B * D * Cp,
            transcendentals=0,
            bytes_accessed=B * D * 4 + D * Cp * 2 + Cp * 4 + B * 4,
        ),
    )(x, w_t, b2)
    return out[:, 0]


# ----------------------------------------------------------------------------
# Public API matching the PyTorch module
# ----------------------------------------------------------------------------
def multi_logistic_regressor(x, weight, bias, *, min_rows_for_pallas: int = 1024,
                             tb: int = 1024):
    """Forward: sigmoid(x @ W^T + b).  x [B,D] f32, weight [C,D], bias [C].

    NOTE: small batches use full-f32 XLA math; the Pallas path uses bf16 MXU
    operands (f32 accumulation), so results differ by up to ~3e-2 across the
    dispatch boundary."""
    if x.shape[0] < min_rows_for_pallas:
        return jax.nn.sigmoid(x @ weight.T + bias)
    w_t, b2, C = prepare_params(weight, bias)
    return _logreg_pallas(x, w_t, b2, num_classes=C, tb=tb)


def predict(x, weight, bias, *, min_rows_for_pallas: int = 1024, tb: int = 1024):
    """Equivalent of MultiLogisticRegressor.predict (argmax over classes)."""
    if x.shape[0] < min_rows_for_pallas:
        return jnp.argmax(jax.nn.sigmoid(x @ weight.T + bias), axis=1)
    w_t, b2, C = prepare_params(weight, bias)
    return _predict_pallas(x, w_t, b2, num_classes=C, tb=tb)


if __name__ == "__main__":
    key = jax.random.PRNGKey(0)
    k_x, k_w = jax.random.split(key)

    batch = 8
    input_dim = 32
    num_classes = 10

    # Deterministic parameter init mirroring init_weights:
    #   weight ~ uniform(0, 1), bias = 0
    weight = jax.random.uniform(k_w, (num_classes, input_dim), dtype=jnp.float32)
    bias = jnp.zeros((num_classes,), dtype=jnp.float32)
    x = jax.random.normal(k_x, (batch, input_dim), dtype=jnp.float32)

    # Exercise the Pallas forward kernel explicitly (hoisted param prep).
    w_t, b2, C = prepare_params(weight, bias)
    out = _logreg_pallas(x, w_t, b2, num_classes=C)
    jax.block_until_ready(out)
    assert out.shape == (batch, num_classes)
    assert out.dtype == jnp.float32

    # Reference with identical bf16 operand rounding + f32 accumulation.
    logits_bf16 = jnp.dot(x.astype(jnp.bfloat16), weight.T.astype(jnp.bfloat16),
                          preferred_element_type=jnp.float32) + bias
    ref_bf16 = jax.nn.sigmoid(logits_bf16)
    assert jnp.allclose(out, ref_bf16, atol=5e-3, rtol=5e-3)

    # Sanity link to the full-f32 PyTorch semantics (loose tol for bf16 MXU).
    ref_f32 = jax.nn.sigmoid(x @ weight.T + bias)
    assert jnp.allclose(out, ref_f32, atol=3e-2, rtol=3e-2)

    # Fused argmax (predict) kernel: must agree with argmax of the kernel's
    # own probabilities (sigmoid is monotonic) and of the bf16 reference.
    preds_pallas = _predict_pallas(x, w_t, b2, num_classes=C)
    jax.block_until_ready(preds_pallas)
    assert preds_pallas.shape == (batch,)
    assert jnp.array_equal(preds_pallas, jnp.argmax(out, axis=1))
    assert jnp.array_equal(preds_pallas, jnp.argmax(ref_bf16, axis=1))

    # Dispatch wrappers (small batch -> pure JAX fallback) and predict().
    out_dispatch = multi_logistic_regressor(x, weight, bias)
    preds = predict(x, weight, bias)
    jax.block_until_ready((out_dispatch, preds))
    assert jnp.array_equal(preds, jnp.argmax(ref_f32, axis=1))

    print("KERNEL_OK")
</pallas_src>

<mosaic_0001>
module attributes {stable_mosaic.version = 11 : i64} {
  func.func @_logreg_fwd_kernel(%arg0: i32, %arg1: memref<8x32xf32, #tpu.memory_space<vmem>>, %arg2: memref<32x128xbf16, #tpu.memory_space<vmem>>, %arg3: memref<1x128xf32, #tpu.memory_space<vmem>>, %arg4: memref<8x10xf32, #tpu.memory_space<vmem>>) attributes {dimension_semantics = [#tpu.dimension_semantics<parallel>], iteration_bounds = array<i64: 1>, scalar_prefetch = 0 : i64, scratch_operands = 0 : i64, tpu.core_type = #tpu.core_type<tc>, window_params = [{transform_indices = @transform_0, window_bounds = array<i64: 8, 32>}, {pipeline_mode = #tpu.pipeline_mode<synchronous>, transform_indices = @transform_1, window_bounds = array<i64: 32, 128>}, {pipeline_mode = #tpu.pipeline_mode<synchronous>, transform_indices = @transform_2, window_bounds = array<i64: 1, 128>}, {transform_indices = @transform_3, window_bounds = array<i64: 8, 10>}]} {
    %c0 = arith.constant 0 : index
    %c0_0 = arith.constant 0 : index
    %0 = vector.load %arg1[%c0, %c0_0] : memref<8x32xf32, #tpu.memory_space<vmem>>, vector<8x32xf32>
    %1 = arith.truncf %0 : vector<8x32xf32> to vector<8x32xbf16>
    %c0_1 = arith.constant 0 : index
    %c0_2 = arith.constant 0 : index
    %2 = vector.load %arg2[%c0_1, %c0_2] : memref<32x128xbf16, #tpu.memory_space<vmem>>, vector<32x128xbf16>
    %cst = arith.constant dense<0.000000e+00> : vector<8x128xf32>
    %3 = tpu.matmul %1, %2, %cst {dimension_numbers = #tpu.dot_dimension_numbers<[1], [0], [0], [1], [0, 0, 1, 1], [], []>} : vector<8x32xbf16>, vector<32x128xbf16>, vector<8x128xf32> -> vector<8x128xf32>
    %c0_3 = arith.constant 0 : index
    %c0_4 = arith.constant 0 : index
    %4 = vector.load %arg3[%c0_3, %c0_4] : memref<1x128xf32, #tpu.memory_space<vmem>>, vector<1x128xf32>
    %5 = vector.broadcast %4 : vector<1x128xf32> to vector<8x128xf32>
    %6 = arith.addf %3, %5 : vector<8x128xf32>
    %7 = vector.extract_strided_slice %6 {offsets = [0, 0], sizes = [8, 10], strides = [1, 1]} : vector<8x128xf32> to vector<8x10xf32>
    %8 = arith.negf %7 : vector<8x10xf32>
    %9 = math.exp %8 : vector<8x10xf32>
    %cst_5 = arith.constant 1.000000e+00 : f32
    %10 = vector.broadcast %cst_5 : f32 to vector<8x10xf32>
    %11 = arith.addf %10, %9 : vector<8x10xf32>
    %12 = arith.divf %10, %11 : vector<8x10xf32>
    %c0_6 = arith.constant 0 : index
    %c0_7 = arith.constant 0 : index
    %13 = vector.load %arg4[%c0_6, %c0_7] : memref<8x10xf32, #tpu.memory_space<vmem>>, vector<8x10xf32>
    tpu.vector_store %arg4[%c0_6, %c0_7], %12 {strides = array<i32>} : memref<8x10xf32, #tpu.memory_space<vmem>>, vector<8x10xf32>,
    return
  }
  func.func @transform_0(%arg0: i32) -> (i32, i32) {
    %c0_i32 = arith.constant 0 : i32
    %c0_i32_0 = arith.constant 0 : i32
    return %arg0, %c0_i32 : i32, i32
  }
  func.func @transform_1(%arg0: i32) -> (i32, i32) {
    %c0_i32 = arith.constant 0 : i32
    %c0_i32_0 = arith.constant 0 : i32
    %c0_i32_1 = arith.constant 0 : i32
    return %c0_i32, %c0_i32_0 : i32, i32
  }
  func.func @transform_2(%arg0: i32) -> (i32, i32) {
    %c0_i32 = arith.constant 0 : i32
    %c0_i32_0 = arith.constant 0 : i32
    %c0_i32_1 = arith.constant 0 : i32
    return %c0_i32, %c0_i32_0 : i32, i32
  }
  func.func @transform_3(%arg0: i32) -> (i32, i32) {
    %c0_i32 = arith.constant 0 : i32
    %c0_i32_0 = arith.constant 0 : i32
    return %arg0, %c0_i32 : i32, i32
  }
}

</mosaic_0001>

<bundles_post_ra>
// kernel: _logreg_pallas.1
= control target key start
LH: loop header
LB: loop body
LE: loop exit
PB: predicated region body
PF: predicated region fallthrough
CT: control target
= control target key end

     0   :  { %8 = vsyncpa [#allocation3], 0  ;;  %s269_s0 = inlined_call_operand.hbm [shape: f32[8,32], index: 0, kind: input, shape index: {}]   ;;  %s270_s1 = inlined_call_operand.hbm [shape: bf16[32,128], index: 1, kind: input, shape index: {}]   ;;  %s271_s2 = inlined_call_operand.vmem [shape: f32[1,128], index: 2, kind: input, shape index: {}]   ;;  %s272_s3 = inlined_call_operand.hbm [shape: f32[8,10], index: 3, kind: output, shape index: {}]  }
   0x1   :  { %9 = vsyncpa [#allocation6], 0 }
   0x2   :  { %10 = vsyncpa [#allocation4], 0  ;;  %s230_s12 = smov [#allocation2]   ;;  %s231_s14 = smov [#allocation5]  }
   0x3   :  { %s17_s13 = sshll.u32 %s230_s12, 4  ;;  %s26_s15 = sshll.u32 %s231_s14, 4  ;;  %s18_s13 = int_to_ptr.vmem [resolvable:$true] %s17_s13  ;;  %s27_s15 = int_to_ptr.vmem [resolvable:$true] %s26_s15 }
   0x4   :  { %s172_s16 = scalar_lea.vmem %s18_s13, 128  ;;  %p177_p1 = scmp.lt.s32.totalorder %s18_s13, %s18_s13 }
   0x5   :  { %p173_p0 = scmp.ne.s32.totalorder %s18_s13, %s172_s16  ;;  %p178_p2 = scmp.lt.s32.totalorder %s172_s16, %s172_s16 }
   0x7   :  { %p179_p3 = por %p178_p2, %p177_p1 }
   0x9   :  { %p180_p4 = pnand %p179_p3, %p173_p0 }
   0xb   :  { %183 = shalt.err (!%p180_p4)
}
   0xc   :  { %20 = dma.hbm_to_vmem [thread:$0]  %s269_s0, 128, %s18_s13, [#allocation3]  }
   0xd   :  { %s192_s19 = scalar_lea.vmem %s27_s15, 256  ;;  %p197_p6 = scmp.lt.s32.totalorder %s27_s15, %s27_s15 }
   0xe   :  { %p193_p5 = scmp.ne.s32.totalorder %s27_s15, %s192_s19  ;;  %p198_p7 = scmp.lt.s32.totalorder %s192_s19, %s192_s19 }
  0x10   :  { %p199_p8 = por %p198_p7, %p197_p6 }
  0x12   :  { %p200_p9 = pnand %p199_p8, %p193_p5 }
  0x14   :  { %203 = shalt.err (!%p200_p9)
}
  0x15   :  { %s232_s20 = smov 64   ;;  %s233_s21 = smov 4  }
  0x16   :  { %32 = dma.hbm_to_vmem [thread:$0]  %s270_s1, 256, %s27_s15, [#allocation6], %s232_s20, %s232_s20, %s233_s21  }
  0x17   :  { %224 = dma.done.wait [#allocation3], 128  }
  0x18   :  { %225 = vsyncadd [#allocation3], 4294967168 }
  0x19   :  { %226 = dma.done.wait [#allocation6], 256  }
  0x1a   :  { %227 = vsyncadd [#allocation6], 4294967040  ;;  %v234_v0 = vmov 0.0   ;;  %vm235_vm0 = vmmov 0   ;;  %v158_v1 = vld [vmem:[#allocation5 + $0x8] sm:$0xff]   ;;  %v159_v2 = vld [vmem:[#allocation5] sm:$0xff]  }
  0x1b   :  { %143 = vmatprep.subr.bf16.mxu0 %v234_v0  ;;  %147 = vmatprep.mubr.msk.bf16.mxu0 %vm235_vm0, %v234_v0  ;;  %v42_v3 = vld [vmem:[#allocation2] sm:$0xff]  ;;  %vm67_vm1 = vcmask 261120   ;;  %s236_s1 = smov [#allocation7]   ;;  %vm117_vm2 = vcmask 80896  }
  0x1c   :  { %144 = vmatpush3.bf16.msra.mxu0 %v158_v1  ;;  %v43_v4 = vpack.c.bf16 %v42_v3, %v42_v3  ;;  %v135_v5 = vld [vmem:[%s271_s2] ss:$0 sm:$0xff]  ;;  %s125_s25 = sshll.u32 %s236_s1, 4  ;;  %s126_s25 = int_to_ptr.vmem [resolvable:$true] %s125_s25 }
  0x1d   :  { %145 = vmatprep.subr.bf16.mxu0 %v234_v0  ;;  %s204_s26 = scalar_lea.vmem %s126_s25, 128  ;;  %p209_p11 = scmp.lt.s32.totalorder %s126_s25, %s126_s25 }
  0x1e   :  { %p205_p10 = scmp.ne.s32.totalorder %s126_s25, %s204_s26  ;;  %p210_p12 = scmp.lt.s32.totalorder %s204_s26, %s204_s26 }
  0x20   :  { %146 = vmatpush3.bf16.msra.mxu0 %v159_v2  ;;  %p211_p13 = por %p210_p12, %p209_p11 }
  0x22   :  { %p212_p0 = pnand %p211_p13, %p205_p10 }
  0x23   :  { %148 = vmatmul.mubr.msk.bf16.vlgmr.msra.gmra.mxu0 %vm67_vm1, %v43_v4 }
  0xe3   :  { %v105_v6 = vpop.f32.mrf.mxu0 }
  0xe4   :  { %v106_v7 = vadd.f32 %v135_v5, %v105_v6 }
  0xe5   :  { %v149_v8 = vpop.f32.mrf.mxu0 }
  0xe6   :  { %v139_v9 = vmul.f32 -1.442695, %v106_v7 }
  0xe7   :  { %v108_v10 = vpop.f32.mrf.mxu0 }
  0xe8   :  { %160 = vpow2.f32 %v139_v9 }
  0xe9   :  { %v150_v11 = vpop.f32.mrf.mxu0 }
  0xf5   :  { %v161_v12 = vpop.eup %160 }
  0xf6   :  { %v114_v13 = vadd.f32 1.0, %v161_v12 }
  0xf8   :  { %162 = vrcp.f32 %v114_v13 }
 0x105   :  { %v163_v14 = vpop.eup %162 }
 0x106   :  { %118 = vst.msk [vmem:[#allocation7] sm:$0xff] %vm117_vm2, %v163_v14 }
 0x107   :  { %215 = shalt.err (!%p212_p0)
}
 0x108   :  { %128 = dma.vmem_to_hbm [thread:$0]  %s126_s25, 128, %s272_s3, [#allocation4]  }
 0x109   :  { %228 = dma.done.wait [#allocation4], 128  }
 0x10a   :  { %229 = vsyncadd [#allocation4], 4294967168 }
 0x10b   :  { %132 = vsyncpa [#allocation3], 1 }
 0x10c   :  { %133 = vsyncpa [#allocation6], 1 }
 0x10d   :  { %134 = vsyncpa [#allocation4], 1 }

</bundles_post_ra>
